<compile_context>
chip_gen: v7x
topology: tpu7x:2x2x1
jax: 0.10.0
libtpu: 0.0.40
codegen_flags: <defaults>
</compile_context>

<pallas_src>
import jax
import jax.numpy as jnp
from jax.experimental import pallas as pl
from jax.experimental.pallas import tpu as pltpu

SELU_ALPHA = 1.6732632423543772848170429916717
SELU_SCALE = 1.0507009873554804934193349852946


def _round_up(x, m):
    return ((x + m - 1) // m) * m


def _ffn_kernel(x_ref, w1_ref, b1_ref, w2_ref, b2_ref, o_ref, acc_ref):
    """One (row-tile i, hidden-chunk k) grid step.

    grid = (row_tiles, hidden_chunks); the hidden chunk is the inner
    (reduction-like) axis, acc_ref carries the partial second matmul.
    """
    k = pl.program_id(1)

    @pl.when(k == 0)
    def _():
        acc_ref[...] = jnp.zeros_like(acc_ref)

    # x arrives f32 (no wrapper-side pad/cast pass); cast to bf16 here for MXU.
    xb = x_ref[...].astype(w1_ref.dtype)
    h = jnp.dot(xb, w1_ref[...], preferred_element_type=jnp.float32)
    h = h + b1_ref[...]
    # SELU in f32 (VPU select/mul + EUP exp).  Clamp the exp argument so the
    # discarded positive branch never produces a non-finite intermediate.
    h = SELU_SCALE * jnp.where(
        h > 0.0, h, SELU_ALPHA * (jnp.exp(jnp.minimum(h, 0.0)) - 1.0))
    # Dropout: identity (inference/eval semantics).
    # TODO(synk): training-mode dropout would use pltpu.prng_seed +
    # pltpu.prng_random_bits for a Bernoulli mask scaled by 1/(1-p).

    acc_ref[...] += jnp.dot(h.astype(w2_ref.dtype), w2_ref[...],
                            preferred_element_type=jnp.float32)

    @pl.when(k == pl.num_programs(1) - 1)
    def _():
        o_ref[...] = (acc_ref[...] + b2_ref[...]).astype(o_ref.dtype)


def prepare_params(w1, b1, w2, b2, compute_dtype=jnp.bfloat16):
    """One-time prep (outside the per-forward path): transpose to [in, out],
    zero-pad ONLY the hidden dim to a multiple of 128 (exact: selu(0)=0 feeds
    zero rows of w2), cast matmul operands to bf16.  Biases stay f32.

    PyTorch nn.Linear layout: w1 [H, D_in], b1 [H]; w2 [D_in, H], b2 [D_in]."""
    hidden, d_in = w1.shape
    h_p = _round_up(hidden, 128)
    w1_t = jnp.pad(w1.T, ((0, 0), (0, h_p - hidden))).astype(compute_dtype)
    w2_t = jnp.pad(w2.T, ((0, h_p - hidden), (0, 0))).astype(compute_dtype)
    b1_p = jnp.pad(b1, (0, h_p - hidden)).astype(jnp.float32).reshape(1, h_p)
    b2_p = b2.astype(jnp.float32).reshape(1, d_in)
    return dict(w1_t=w1_t, b1=b1_p, w2_t=w2_t, b2=b2_p,
                d_in=d_in, hidden=hidden)


def _derive_vmem_limit():
    try:
        cap = int(pltpu.get_tpu_info().vmem_capacity_bytes)
    except Exception:
        cap = 64 * 1024 * 1024          # conservative (v7x-safe) fallback
    return (cap * 3) // 4               # ~96 MiB on v5e/v6e, ~48 MiB on v7x


def _pick_hidden_chunk(h_p):
    # Largest 128-multiple chunk (<= 2048) that divides the padded hidden dim.
    for c in (2048, 1024, 512, 256, 128):
        if h_p % c == 0:
            return c
    return h_p


def feed_forward(x, params, *, tm=1024, vmem_limit_bytes=None):
    """x: [..., D_in]; params from prepare_params()."""
    w1_t, b1 = params["w1_t"], params["b1"]
    w2_t, b2 = params["w2_t"], params["b2"]
    d_in = params["d_in"]
    _, h_p = w1_t.shape
    tk_h = _pick_hidden_chunk(h_p)
    n_chunks = h_p // tk_h

    orig_shape = x.shape
    x2d = x.reshape(-1, d_in)
    n = x2d.shape[0]
    out_dtype = x.dtype

    if vmem_limit_bytes is None:
        vmem_limit_bytes = _derive_vmem_limit()

    # ---- derive the row tile from the VMEM budget --------------------------
    weight_block_bytes = (d_in * tk_h + tk_h * d_in) * 2      # bf16 w1+w2 chunks
    bias_block_bytes = (tk_h + d_in) * 4                      # f32 b1+b2 chunks
    fixed = 2 * (weight_block_bytes + bias_block_bytes)       # double-buffer worst case
    per_row = (2 * d_in * 4        # x tile, f32, 2 buffers
               + 2 * d_in * 4      # out tile, 2 buffers
               + d_in * 4          # f32 accumulator scratch
               + 2 * tk_h * 4)     # f32 SELU intermediate (+ headroom)
    budget = int(vmem_limit_bytes * 0.6)
    tm_cap = max(128, (budget - fixed) // max(per_row, 1))
    tm_eff = min(tm, (tm_cap // 8) * 8)
    tm_eff = max(8, min(tm_eff, _round_up(n, 8)))
    # Ensure >=2 row tiles when possible so the "parallel" axis can shard
    # across the two v7x TensorCores (megacore).
    if n > 8 and pl.cdiv(n, tm_eff) < 2:
        tm_eff = _round_up(pl.cdiv(n, 2), 8)
    n_p = _round_up(n, tm_eff)

    x_pad = x2d if n_p == n else jnp.pad(x2d, ((0, n_p - n), (0, 0)))

    grid = (n_p // tm_eff, n_chunks)
    weights_constant = (n_chunks == 1)   # single chunk -> weight blocks never change

    def build(single_buffer_consts):
        def spec(shape, imap, constant):
            if single_buffer_consts and constant:
                # Constant-index blocks are DMA'd once; skip double-buffering.
                return pl.BlockSpec(shape, imap, pipeline_mode=pl.Buffered(1))
            return pl.BlockSpec(shape, imap)

        return pl.pallas_call(
            _ffn_kernel,
            out_shape=jax.ShapeDtypeStruct((n_p, d_in), out_dtype),
            grid=grid,
            in_specs=[
                pl.BlockSpec((tm_eff, d_in), lambda i, k: (i, 0)),          # x rows (f32, unpadded)
                spec((d_in, tk_h), lambda i, k: (0, k), weights_constant),  # w1 chunk
                spec((1, tk_h), lambda i, k: (0, k), weights_constant),     # b1 chunk
                spec((tk_h, d_in), lambda i, k: (k, 0), weights_constant),  # w2 chunk
                spec((1, d_in), lambda i, k: (0, 0), True),                 # b2 (always const)
            ],
            out_specs=pl.BlockSpec((tm_eff, d_in), lambda i, k: (i, 0)),
            scratch_shapes=[pltpu.VMEM((tm_eff, d_in), jnp.float32)],
            compiler_params=pltpu.CompilerParams(
                dimension_semantics=("parallel", "arbitrary"),
                vmem_limit_bytes=int(vmem_limit_bytes),
            ),
        )

    try:
        out = build(True)(x_pad, w1_t, b1, w2_t, b2)
    except Exception:
        # pipeline_mode=pl.Buffered(1) not supported on this jax version.
        out = build(False)(x_pad, w1_t, b1, w2_t, b2)

    if n_p != n:
        out = out[:n]
    return out.reshape(orig_shape)


def _reference(x, w1, b1, w2, b2):
    h = x @ w1.T + b1
    h = SELU_SCALE * jnp.where(h > 0, h, SELU_ALPHA * (jnp.exp(h) - 1.0))
    return h @ w2.T + b2


if __name__ == "__main__":
    # Small shapes consistent with the module: batch=2, seq=8, input_dims=32,
    # hidden_layer_dims=64, dropout=0.1 (inactive in eval mode).
    batch, seq, input_dims, hidden_dims = 2, 8, 32, 64

    key = jax.random.PRNGKey(0)
    kx, kw1, kb1, kw2, kb2 = jax.random.split(key, 5)

    x = jax.random.normal(kx, (batch, seq, input_dims), dtype=jnp.float32)
    # PyTorch nn.Linear layout: [out_features, in_features].
    w1 = jax.random.normal(kw1, (hidden_dims, input_dims), jnp.float32) * 0.1
    b1 = jax.random.normal(kb1, (hidden_dims,), jnp.float32) * 0.1
    w2 = jax.random.normal(kw2, (input_dims, hidden_dims), jnp.float32) * 0.1
    b2 = jax.random.normal(kb2, (input_dims,), jnp.float32) * 0.1

    params = prepare_params(w1, b1, w2, b2)   # hoisted one-time transpose/pad/bf16
    out = feed_forward(x, params)
    jax.block_until_ready(out)

    ref = _reference(x, w1, b1, w2, b2)
    assert out.shape == x.shape
    assert out.dtype == x.dtype
    # bf16 matmul operands (f32 accumulation) -> tolerance loosened vs f32 ref.
    assert jnp.allclose(out, ref, atol=3e-2, rtol=3e-2), "mismatch vs reference"

    print("KERNEL_OK")
</pallas_src>

<mosaic_0001>
module attributes {stable_mosaic.version = 11 : i64} {
  func.func @_ffn_kernel(%arg0: i32, %arg1: i32, %arg2: memref<8x32xf32, #tpu.memory_space<vmem>>, %arg3: memref<32x128xbf16, #tpu.memory_space<vmem>>, %arg4: memref<1x128xf32, #tpu.memory_space<vmem>>, %arg5: memref<128x32xbf16, #tpu.memory_space<vmem>>, %arg6: memref<1x32xf32, #tpu.memory_space<vmem>>, %arg7: memref<8x32xf32, #tpu.memory_space<vmem>>, %arg8: memref<8x32xf32, #tpu.memory_space<vmem>>) attributes {dimension_semantics = [#tpu.dimension_semantics<parallel>, #tpu.dimension_semantics<arbitrary>], iteration_bounds = array<i64: 2, 1>, scalar_prefetch = 0 : i64, scratch_operands = 1 : i64, tpu.core_type = #tpu.core_type<tc>, window_params = [{transform_indices = @transform_0, window_bounds = array<i64: 8, 32>}, {pipeline_mode = #tpu.pipeline_mode<synchronous>, transform_indices = @transform_1, window_bounds = array<i64: 32, 128>}, {pipeline_mode = #tpu.pipeline_mode<synchronous>, transform_indices = @transform_2, window_bounds = array<i64: 1, 128>}, {pipeline_mode = #tpu.pipeline_mode<synchronous>, transform_indices = @transform_3, window_bounds = array<i64: 128, 32>}, {pipeline_mode = #tpu.pipeline_mode<synchronous>, transform_indices = @transform_4, window_bounds = array<i64: 1, 32>}, {transform_indices = @transform_5, window_bounds = array<i64: 8, 32>}]} {
    %c0_i32 = arith.constant 0 : i32
    %0 = arith.cmpi eq, %arg1, %c0_i32 : i32
    %1 = arith.extui %0 : i1 to i32
    %c0_i32_0 = arith.constant 0 : i32
    %2 = arith.cmpi ne, %1, %c0_i32_0 : i32
    scf.if %2 {
      %cst_20 = arith.constant 0.000000e+00 : f32
      %31 = vector.broadcast %cst_20 : f32 to vector<8x32xf32>
      %c0_21 = arith.constant 0 : index
      %c0_22 = arith.constant 0 : index
      %32 = vector.load %arg8[%c0_21, %c0_22] : memref<8x32xf32, #tpu.memory_space<vmem>>, vector<8x32xf32>
      tpu.vector_store %arg8[%c0_21, %c0_22], %31 {strides = array<i32>} : memref<8x32xf32, #tpu.memory_space<vmem>>, vector<8x32xf32>,
    } else {
    }
    %c0 = arith.constant 0 : index
    %c0_1 = arith.constant 0 : index
    %3 = vector.load %arg2[%c0, %c0_1] : memref<8x32xf32, #tpu.memory_space<vmem>>, vector<8x32xf32>
    %4 = arith.truncf %3 : vector<8x32xf32> to vector<8x32xbf16>
    %c0_2 = arith.constant 0 : index
    %c0_3 = arith.constant 0 : index
    %5 = vector.load %arg3[%c0_2, %c0_3] : memref<32x128xbf16, #tpu.memory_space<vmem>>, vector<32x128xbf16>
    %cst = arith.constant dense<0.000000e+00> : vector<8x128xf32>
    %6 = tpu.matmul %4, %5, %cst {dimension_numbers = #tpu.dot_dimension_numbers<[1], [0], [0], [1], [0, 0, 1, 1], [], []>} : vector<8x32xbf16>, vector<32x128xbf16>, vector<8x128xf32> -> vector<8x128xf32>
    %c0_4 = arith.constant 0 : index
    %c0_5 = arith.constant 0 : index
    %7 = vector.load %arg4[%c0_4, %c0_5] : memref<1x128xf32, #tpu.memory_space<vmem>>, vector<1x128xf32>
    %8 = vector.broadcast %7 : vector<1x128xf32> to vector<8x128xf32>
    %9 = arith.addf %6, %8 : vector<8x128xf32>
    %cst_6 = arith.constant 0.000000e+00 : f32
    %10 = vector.broadcast %cst_6 : f32 to vector<8x128xf32>
    %11 = arith.cmpf ogt, %9, %10 : vector<8x128xf32>
    %cst_7 = arith.constant 0.000000e+00 : f32
    %12 = vector.broadcast %cst_7 : f32 to vector<8x128xf32>
    %13 = arith.minimumf %9, %12 : vector<8x128xf32>
    %14 = math.exp %13 : vector<8x128xf32>
    %cst_8 = arith.constant 1.000000e+00 : f32
    %15 = vector.broadcast %cst_8 : f32 to vector<8x128xf32>
    %16 = arith.subf %14, %15 : vector<8x128xf32>
    %cst_9 = arith.constant 1.67326319 : f32
    %17 = vector.broadcast %cst_9 : f32 to vector<8x128xf32>
    %18 = arith.mulf %17, %16 : vector<8x128xf32>
    %19 = arith.select %11, %9, %18 : vector<8x128xi1>, vector<8x128xf32>
    %cst_10 = arith.constant 1.05070102 : f32
    %20 = vector.broadcast %cst_10 : f32 to vector<8x128xf32>
    %21 = arith.mulf %20, %19 : vector<8x128xf32>
    %c0_11 = arith.constant 0 : index
    %c0_12 = arith.constant 0 : index
    %22 = vector.load %arg8[%c0_11, %c0_12] : memref<8x32xf32, #tpu.memory_space<vmem>>, vector<8x32xf32>
    %23 = arith.truncf %21 : vector<8x128xf32> to vector<8x128xbf16>
    %c0_13 = arith.constant 0 : index
    %c0_14 = arith.constant 0 : index
    %24 = vector.load %arg5[%c0_13, %c0_14] : memref<128x32xbf16, #tpu.memory_space<vmem>>, vector<128x32xbf16>
    %cst_15 = arith.constant dense<0.000000e+00> : vector<8x32xf32>
    %25 = tpu.matmul %23, %24, %cst_15 {dimension_numbers = #tpu.dot_dimension_numbers<[1], [0], [0], [1], [0, 0, 1, 1], [], []>} : vector<8x128xbf16>, vector<128x32xbf16>, vector<8x32xf32> -> vector<8x32xf32>
    %26 = arith.addf %22, %25 : vector<8x32xf32>
    %c0_16 = arith.constant 0 : index
    %c0_17 = arith.constant 0 : index
    %27 = vector.load %arg8[%c0_16, %c0_17] : memref<8x32xf32, #tpu.memory_space<vmem>>, vector<8x32xf32>
    tpu.vector_store %arg8[%c0_16, %c0_17], %26 {strides = array<i32>} : memref<8x32xf32, #tpu.memory_space<vmem>>, vector<8x32xf32>,
    %c0_i32_18 = arith.constant 0 : i32
    %28 = arith.cmpi eq, %arg1, %c0_i32_18 : i32
    %29 = arith.extui %28 : i1 to i32
    %c0_i32_19 = arith.constant 0 : i32
    %30 = arith.cmpi ne, %29, %c0_i32_19 : i32
    scf.if %30 {
      %c0_20 = arith.constant 0 : index
      %c0_21 = arith.constant 0 : index
      %31 = vector.load %arg8[%c0_20, %c0_21] : memref<8x32xf32, #tpu.memory_space<vmem>>, vector<8x32xf32>
      %c0_22 = arith.constant 0 : index
      %c0_23 = arith.constant 0 : index
      %32 = vector.load %arg6[%c0_22, %c0_23] : memref<1x32xf32, #tpu.memory_space<vmem>>, vector<1x32xf32>
      %33 = vector.broadcast %32 : vector<1x32xf32> to vector<8x32xf32>
      %34 = arith.addf %31, %33 : vector<8x32xf32>
      %c0_24 = arith.constant 0 : index
      %c0_25 = arith.constant 0 : index
      %35 = vector.load %arg7[%c0_24, %c0_25] : memref<8x32xf32, #tpu.memory_space<vmem>>, vector<8x32xf32>
      tpu.vector_store %arg7[%c0_24, %c0_25], %34 {strides = array<i32>} : memref<8x32xf32, #tpu.memory_space<vmem>>, vector<8x32xf32>,
    } else {
    }
    return
  }
  func.func @transform_0(%arg0: i32, %arg1: i32) -> (i32, i32) {
    %c0_i32 = arith.constant 0 : i32
    %c0_i32_0 = arith.constant 0 : i32
    return %arg0, %c0_i32 : i32, i32
  }
  func.func @transform_1(%arg0: i32, %arg1: i32) -> (i32, i32) {
    %c0_i32 = arith.constant 0 : i32
    %c0_i32_0 = arith.constant 0 : i32
    return %c0_i32, %arg1 : i32, i32
  }
  func.func @transform_2(%arg0: i32, %arg1: i32) -> (i32, i32) {
    %c0_i32 = arith.constant 0 : i32
    %c0_i32_0 = arith.constant 0 : i32
    return %c0_i32, %arg1 : i32, i32
  }
  func.func @transform_3(%arg0: i32, %arg1: i32) -> (i32, i32) {
    %c0_i32 = arith.constant 0 : i32
    %c0_i32_0 = arith.constant 0 : i32
    return %arg1, %c0_i32 : i32, i32
  }
  func.func @transform_4(%arg0: i32, %arg1: i32) -> (i32, i32) {
    %c0_i32 = arith.constant 0 : i32
    %c0_i32_0 = arith.constant 0 : i32
    %c0_i32_1 = arith.constant 0 : i32
    return %c0_i32, %c0_i32_0 : i32, i32
  }
  func.func @transform_5(%arg0: i32, %arg1: i32) -> (i32, i32) {
    %c0_i32 = arith.constant 0 : i32
    %c0_i32_0 = arith.constant 0 : i32
    return %arg0, %c0_i32 : i32, i32
  }
}

module attributes {stable_mosaic.version = 11 : i64} {
  func.func @_ffn_kernel(%arg0: i32, %arg1: i32, %arg2: memref<8x32xf32, #tpu.memory_space<vmem>>, %arg3: memref<32x128xbf16, #tpu.memory_space<vmem>>, %arg4: memref<1x128xf32, #tpu.memory_space<vmem>>, %arg5: memref<128x32xbf16, #tpu.memory_space<vmem>>, %arg6: memref<1x32xf32, #tpu.memory_space<vmem>>, %arg7: memref<8x32xf32, #tpu.memory_space<vmem>>, %arg8: memref<8x32xf32, #tpu.memory_space<vmem>>) attributes {dimension_semantics = [#tpu.dimension_semantics<parallel>, #tpu.dimension_semantics<arbitrary>], iteration_bounds = array<i64: 2, 1>, scalar_prefetch = 0 : i64, scratch_operands = 1 : i64, tpu.core_type = #tpu.core_type<tc>, window_params = [{transform_indices = @transform_0, window_bounds = array<i64: 8, 32>}, {transform_indices = @transform_1, window_bounds = array<i64: 32, 128>}, {transform_indices = @transform_2, window_bounds = array<i64: 1, 128>}, {transform_indices = @transform_3, window_bounds = array<i64: 128, 32>}, {pipeline_mode = #tpu.pipeline_mode<synchronous>, transform_indices = @transform_4, window_bounds = array<i64: 1, 32>}, {transform_indices = @transform_5, window_bounds = array<i64: 8, 32>}]} {
    %c0_i32 = arith.constant 0 : i32
    %0 = arith.cmpi eq, %arg1, %c0_i32 : i32
    %1 = arith.extui %0 : i1 to i32
    %c0_i32_0 = arith.constant 0 : i32
    %2 = arith.cmpi ne, %1, %c0_i32_0 : i32
    scf.if %2 {
      %cst_20 = arith.constant 0.000000e+00 : f32
      %31 = vector.broadcast %cst_20 : f32 to vector<8x32xf32>
      %c0_21 = arith.constant 0 : index
      %c0_22 = arith.constant 0 : index
      %32 = vector.load %arg8[%c0_21, %c0_22] : memref<8x32xf32, #tpu.memory_space<vmem>>, vector<8x32xf32>
      tpu.vector_store %arg8[%c0_21, %c0_22], %31 {strides = array<i32>} : memref<8x32xf32, #tpu.memory_space<vmem>>, vector<8x32xf32>,
    } else {
    }
    %c0 = arith.constant 0 : index
    %c0_1 = arith.constant 0 : index
    %3 = vector.load %arg2[%c0, %c0_1] : memref<8x32xf32, #tpu.memory_space<vmem>>, vector<8x32xf32>
    %4 = arith.truncf %3 : vector<8x32xf32> to vector<8x32xbf16>
    %c0_2 = arith.constant 0 : index
    %c0_3 = arith.constant 0 : index
    %5 = vector.load %arg3[%c0_2, %c0_3] : memref<32x128xbf16, #tpu.memory_space<vmem>>, vector<32x128xbf16>
    %cst = arith.constant dense<0.000000e+00> : vector<8x128xf32>
    %6 = tpu.matmul %4, %5, %cst {dimension_numbers = #tpu.dot_dimension_numbers<[1], [0], [0], [1], [0, 0, 1, 1], [], []>} : vector<8x32xbf16>, vector<32x128xbf16>, vector<8x128xf32> -> vector<8x128xf32>
    %c0_4 = arith.constant 0 : index
    %c0_5 = arith.constant 0 : index
    %7 = vector.load %arg4[%c0_4, %c0_5] : memref<1x128xf32, #tpu.memory_space<vmem>>, vector<1x128xf32>
    %8 = vector.broadcast %7 : vector<1x128xf32> to vector<8x128xf32>
    %9 = arith.addf %6, %8 : vector<8x128xf32>
    %cst_6 = arith.constant 0.000000e+00 : f32
    %10 = vector.broadcast %cst_6 : f32 to vector<8x128xf32>
    %11 = arith.cmpf ogt, %9, %10 : vector<8x128xf32>
    %cst_7 = arith.constant 0.000000e+00 : f32
    %12 = vector.broadcast %cst_7 : f32 to vector<8x128xf32>
    %13 = arith.minimumf %9, %12 : vector<8x128xf32>
    %14 = math.exp %13 : vector<8x128xf32>
    %cst_8 = arith.constant 1.000000e+00 : f32
    %15 = vector.broadcast %cst_8 : f32 to vector<8x128xf32>
    %16 = arith.subf %14, %15 : vector<8x128xf32>
    %cst_9 = arith.constant 1.67326319 : f32
    %17 = vector.broadcast %cst_9 : f32 to vector<8x128xf32>
    %18 = arith.mulf %17, %16 : vector<8x128xf32>
    %19 = arith.select %11, %9, %18 : vector<8x128xi1>, vector<8x128xf32>
    %cst_10 = arith.constant 1.05070102 : f32
    %20 = vector.broadcast %cst_10 : f32 to vector<8x128xf32>
    %21 = arith.mulf %20, %19 : vector<8x128xf32>
    %c0_11 = arith.constant 0 : index
    %c0_12 = arith.constant 0 : index
    %22 = vector.load %arg8[%c0_11, %c0_12] : memref<8x32xf32, #tpu.memory_space<vmem>>, vector<8x32xf32>
    %23 = arith.truncf %21 : vector<8x128xf32> to vector<8x128xbf16>
    %c0_13 = arith.constant 0 : index
    %c0_14 = arith.constant 0 : index
    %24 = vector.load %arg5[%c0_13, %c0_14] : memref<128x32xbf16, #tpu.memory_space<vmem>>, vector<128x32xbf16>
    %cst_15 = arith.constant dense<0.000000e+00> : vector<8x32xf32>
    %25 = tpu.matmul %23, %24, %cst_15 {dimension_numbers = #tpu.dot_dimension_numbers<[1], [0], [0], [1], [0, 0, 1, 1], [], []>} : vector<8x128xbf16>, vector<128x32xbf16>, vector<8x32xf32> -> vector<8x32xf32>
    %26 = arith.addf %22, %25 : vector<8x32xf32>
    %c0_16 = arith.constant 0 : index
    %c0_17 = arith.constant 0 : index
    %27 = vector.load %arg8[%c0_16, %c0_17] : memref<8x32xf32, #tpu.memory_space<vmem>>, vector<8x32xf32>
    tpu.vector_store %arg8[%c0_16, %c0_17], %26 {strides = array<i32>} : memref<8x32xf32, #tpu.memory_space<vmem>>, vector<8x32xf32>,
    %c0_i32_18 = arith.constant 0 : i32
    %28 = arith.cmpi eq, %arg1, %c0_i32_18 : i32
    %29 = arith.extui %28 : i1 to i32
    %c0_i32_19 = arith.constant 0 : i32
    %30 = arith.cmpi ne, %29, %c0_i32_19 : i32
    scf.if %30 {
      %c0_20 = arith.constant 0 : index
      %c0_21 = arith.constant 0 : index
      %31 = vector.load %arg8[%c0_20, %c0_21] : memref<8x32xf32, #tpu.memory_space<vmem>>, vector<8x32xf32>
      %c0_22 = arith.constant 0 : index
      %c0_23 = arith.constant 0 : index
      %32 = vector.load %arg6[%c0_22, %c0_23] : memref<1x32xf32, #tpu.memory_space<vmem>>, vector<1x32xf32>
      %33 = vector.broadcast %32 : vector<1x32xf32> to vector<8x32xf32>
      %34 = arith.addf %31, %33 : vector<8x32xf32>
      %c0_24 = arith.constant 0 : index
      %c0_25 = arith.constant 0 : index
      %35 = vector.load %arg7[%c0_24, %c0_25] : memref<8x32xf32, #tpu.memory_space<vmem>>, vector<8x32xf32>
      tpu.vector_store %arg7[%c0_24, %c0_25], %34 {strides = array<i32>} : memref<8x32xf32, #tpu.memory_space<vmem>>, vector<8x32xf32>,
    } else {
    }
    return
  }
  func.func @transform_0(%arg0: i32, %arg1: i32) -> (i32, i32) {
    %c0_i32 = arith.constant 0 : i32
    %c0_i32_0 = arith.constant 0 : i32
    return %arg0, %c0_i32 : i32, i32
  }
  func.func @transform_1(%arg0: i32, %arg1: i32) -> (i32, i32) {
    %c0_i32 = arith.constant 0 : i32
    %c0_i32_0 = arith.constant 0 : i32
    return %c0_i32, %arg1 : i32, i32
  }
  func.func @transform_2(%arg0: i32, %arg1: i32) -> (i32, i32) {
    %c0_i32 = arith.constant 0 : i32
    %c0_i32_0 = arith.constant 0 : i32
    return %c0_i32, %arg1 : i32, i32
  }
  func.func @transform_3(%arg0: i32, %arg1: i32) -> (i32, i32) {
    %c0_i32 = arith.constant 0 : i32
    %c0_i32_0 = arith.constant 0 : i32
    return %arg1, %c0_i32 : i32, i32
  }
  func.func @transform_4(%arg0: i32, %arg1: i32) -> (i32, i32) {
    %c0_i32 = arith.constant 0 : i32
    %c0_i32_0 = arith.constant 0 : i32
    %c0_i32_1 = arith.constant 0 : i32
    return %c0_i32, %c0_i32_0 : i32, i32
  }
  func.func @transform_5(%arg0: i32, %arg1: i32) -> (i32, i32) {
    %c0_i32 = arith.constant 0 : i32
    %c0_i32_0 = arith.constant 0 : i32
    return %arg0, %c0_i32 : i32, i32
  }
}

</mosaic_0001>

<bundles_post_ra>
// kernel: tpu_custom_call.1
= control target key start
LH: loop header
LB: loop body
LE: loop exit
PB: predicated region body
PF: predicated region fallthrough
CT: control target
= control target key end

     0   :  { %10 = vsyncpa [#allocation4], 0  ;;  %s1015_s0 = inlined_call_operand.vmem [shape: f32[16,32], index: 0, kind: input, shape index: {}]   ;;  %s1016_s1 = inlined_call_operand.vmem [shape: bf16[32,128], index: 1, kind: input, shape index: {}]   ;;  %s1017_s2 = inlined_call_operand.vmem [shape: f32[1,128], index: 2, kind: input, shape index: {}]   ;;  %s1018_s3 = inlined_call_operand.vmem [shape: bf16[128,32], index: 3, kind: input, shape index: {}]   ;;  %s1019_s4 = inlined_call_operand.vmem [shape: f32[1,32], index: 4, kind: input, shape index: {}]   ;;  %s1020_s5 = inlined_call_operand.hbm [shape: f32[16,32], index: 5, kind: output, shape index: {}]  }
   0x1   :  { %12 = vsyncpa [#allocation4 + $0x1], 0  ;;  %s863_s18 = smov 0   ;;  %s865_s19 = smov 0  }
   0x2   :  { %s867_s20 = smov 0   ;;  %s869_s21 = smov 0  }
   0x3   :  { %s871_s22 = smov 0   ;;  %s873_s23 = smov 0  }
   0x4 LB: > { %s613_s24 = sadd.s32 4294967295, %s828_s23   ;;  %s614_s25 = sadd.s32 4294967294, %s828_s23   ;;  %s828_s23 = sphi %s873_s23, %s18_s23   ;;  %s824_s22 = sphi %s871_s22, %s1027_s22   ;;  %s820_s21 = sphi %s869_s21, %s1026_s21   ;;  %s816_s20 = sphi %s867_s20, %s1025_s20   ;;  %s812_s19 = sphi %s865_s19, %s1024_s19   ;;  %s808_s18 = sphi %s863_s18, %s1023_s18  }
   0x5   : > { %s30_s26 = sadd.s32 1, %s824_s22  ;;  %s162_s27 = sadd.s32 1, %s816_s20 }
   0x6   : > { %p32_p0 = scmp.ge.s32.totalorder %s30_s26, 2  ;;  %p172_p1 = scmp.ne.s32.totalorder %s816_s20, %s812_s19 }
   0x7   : > { %p173_p2 = scmp.eq.s32.totalorder %s613_s24, 1  ;;  %p178_p3 = scmp.ne.s32.totalorder %s812_s19, %s808_s18 }
   0x8   : > { %s1029_s26 = smov (%p32_p0, %s30_s26), 0  ;;  %p179_p5 = scmp.eq.s32.totalorder %s614_s25, 1 }
   0x9   : > { %p903_p4 = por %p173_p2, %p172_p1  ;;  %s159_s29 = ssub.s32 %s824_s22, %s1029_s26 }
   0xa   : > { %p620_p6 = scmp.ge.s32.totalorder %s828_s23, 1  ;;  %p160_p7 = scmp.eq.s32.totalorder %s159_s29, 0 }
   0xb   : > { %p910_p8 = por %p179_p5, %p178_p3  ;;  %p229_p9 = scmp.lt.s32.totalorder %s828_s23, 3 }
   0xc   : > { %s916_s6 = scalar_select %p160_p7, %s816_s20, %s162_s27  }
   0xd   : > { %p230_p10 = pnand %p620_p6, %p229_p9 }
   0xe   : > { %v738_v0 = vld [vmem:[%s1016_s1] sm:$0xff] (!%p230_p10)   ;;  %v830_v1 = vmov (!%p230_p10), 0.0   ;;  %v739_v2 = vld [vmem:[%s1016_s1 + $0x8] sm:$0xff] (!%p230_p10)   ;;  %vm831_vm0 = vmmov (!%p230_p10), 0   ;;  %p268_p11 = scmp.lt.s32.totalorder (!%p230_p10), %s820_s21, 1  ;;  %vm290_vm1 = vcmask (!%p230_p10), 261120  }
   0xf   : > { %233 = sbr.rel (%p230_p10) target bundleno = 505 (0x1f9), region = 40  ;;  %653 = vmatprep.subr.bf16.mxu0 (!%p230_p10), %v830_v1  ;;  %661 = vmatprep.subr.bf16.mxu1 (!%p230_p10), %v830_v1  ;;  %291 = vst.msk [vmem:[#allocation2] sm:$0xff] (!%p230_p10), %vm290_vm1, %v830_v1  ;;  %v740_v3 = vld [vmem:[%s1018_s3] sm:$0xff] (!%p230_p10)   ;;  %v741_v6 = vld [vmem:[%s1018_s3 + $0x8] sm:$0xff] (!%p230_p10)   ;;  %v742_v7 = vld [vmem:[%s1018_s3 + $0x10] sm:$0xff] (!%p230_p10)   ;;  %s265_s25 = sand.u32 (!%p230_p10), 1, %s812_s19  }
  0x10   : > { %654 = vmatpush3.bf16.msra.mxu0 (!%p230_p10), %v738_v0  ;;  %657 = vmatprep.mubr.msk.bf16.mxu0 (!%p230_p10), %vm831_vm0, %v830_v1  ;;  %v743_v8 = vld [vmem:[%s1018_s3 + $0x18] sm:$0xff] (!%p230_p10)   ;;  %v744_v9 = vld [vmem:[%s1018_s3 + $0x20] sm:$0xff] (!%p230_p10)   ;;  %v745_v10 = vld [vmem:[%s1018_s3 + $0x28] sm:$0xff] (!%p230_p10)   ;;  %s621_s27 = sshll.u32 (!%p230_p10), %s265_s25, 3  ;;  %s638_s8 = sshll.u32 (!%p230_p10), %s820_s21, 7 }
  0x11   : > { %655 = vmatprep.subr.bf16.mxu0 (!%p230_p10), %v830_v1  ;;  %677 = vmatprep.mubr.msk.bf16.mxu1 (!%p230_p10), %vm831_vm0, %v830_v1  ;;  %v746_v11 = vld [vmem:[%s1018_s3 + $0x30] sm:$0xff] (!%p230_p10)   ;;  %v747_v12 = vld [vmem:[%s1018_s3 + $0x38] sm:$0xff] (!%p230_p10)   ;;  %v623_v13 = vld [vmem:[%s1017_s2] ss:$0 sm:$0xff] (!%p230_p10)  ;;  %s267_s9 = scalar_lea.vmem (!%p230_p10), [#allocation3], %s621_s27 }
  0x12   : > { %662 = vmatpush3.bf16.msra.mxu1 (!%p230_p10), %v740_v3  ;;  %v636_v33 = vld [vmem:[%s1019_s4] ss:$0 sm:$0xff] (!%p230_p10)  ;;  %s504_s10 = sshll.u32 (!%p230_p10), %s267_s9, 4  ;;  %s969_s10 = int_to_ptr.vmem [resolvable:$true] %s504_s10 }
  0x13   : > { %663 = vmatprep.subr.bf16.mxu1 (!%p230_p10), %v830_v1  ;;  %s750_s15 = scalar_lea.vmem (!%p230_p10), %s969_s10, 128 }
  0x14   : > { %656 = vmatpush3.bf16.msra.mxu0 (!%p230_p10), %v739_v2  ;;  %p751_p12 = scmp.ne.s32.totalorder (!%p230_p10), %s969_s10, %s750_s15 }
  0x16   : > { %s269_s13 = scalar_select %p268_p11, %s820_s21, 1  ;;  %664 = vmatpush3.bf16.msra.mxu1 %v741_v6  ;;  %v369_v27 = vld [vmem:[#allocation2] sm:$0xff] }
  0x17   : > { %665 = vmatprep.subr.bf16.mxu1 %v830_v1  ;;  %p752_p13 = pnand %p751_p12, %p903_p4  ;;  %s832_s21 = smov [#allocation3]  }
  0x18   : > { %s622_s14 = sshll.u32 %s269_s13, 3  ;;  %s967_s13 = scalar_lea.hbm %s1020_s5, %s638_s8 }
  0x19   : > { %s271_s17 = scalar_lea.vmem %s1015_s0, %s622_s14  ;;  %s491_s14 = scalar_lea.sflag [#allocation4], %s265_s25 }
  0x1a   : > { %v292_v4 = vld [vmem:[%s271_s17] sm:$0xff]  ;;  %666 = vmatpush3.bf16.msra.mxu1 %v742_v7  ;;  %p753_p0 = pneg %p752_p13  ;;  %s754_s16 = sshll.u32 %s832_s21, 4  ;;  %s755_s16 = int_to_ptr.vmem [resolvable:$false] %s754_s16 }
  0x1b   : > { %v293_v5 = vpack.c.bf16 %v292_v4, %v292_v4  ;;  %667 = vmatprep.subr.bf16.mxu1 %v830_v1  ;;  %s756_s17 = scalar_lea.vmem %s755_s16, 256  ;;  %p757_p1 = scmp.lt.s32.totalorder %s969_s10, %s755_s16 }
  0x1c   : > { %p758_p2 = scmp.lt.s32.totalorder %s756_s17, %s750_s15 }
  0x1d   : > { %658 = vmatmul.mubr.msk.bf16.vlgmr.msra.gmra.mrb[0].mxu0 %vm290_vm1, %v293_v5 }
  0x1e   : > { %668 = vmatpush3.bf16.msra.mxu1 %v743_v8  ;;  %p759_p3 = por %p758_p2, %p757_p1 }
  0x1f   : > { %669 = vmatprep.subr.bf16.mxu1 %v830_v1 }
  0x20   : > { %p760_p5 = pnand %p759_p3, %p753_p0 }
  0x22   : > { %670 = vmatpush3.bf16.msra.mxu1 %v744_v9 }
  0x23   : > { %671 = vmatprep.subr.bf16.mxu1 %v830_v1 }
  0x26   : > { %672 = vmatpush3.bf16.msra.mxu1 %v745_v10 }
  0x27   : > { %673 = vmatprep.subr.bf16.mxu1 %v830_v1 }
  0x2a   : > { %674 = vmatpush3.bf16.msra.mxu1 %v746_v11 }
  0x2b   : > { %675 = vmatprep.subr.bf16.mxu1 %v830_v1 }
  0x2e   : > { %676 = vmatpush3.bf16.msra.mxu1 %v747_v12 }
  0xf0   : > { %v355_v14 = vpop.f32.mrb[0].mxu0 }
  0xf1   : > { %v356_v15 = vadd.f32 %v623_v13, %v355_v14  ;;  %v659_v16 = vpop.f32.mrb[1].mxu0 }
  0xf2   : > { %v358_v17 = vpop.f32.mrb[2].mxu0 }
  0xf3   : > { %v362_v18 = vmin.f32 %v356_v15, 0.0  ;;  %v660_v19 = vpop.f32.mrb[3].mxu0  ;;  %vm361_vm2 = vcmp.gt.f32.partialorder %v356_v15, 0.0 }
  0xf5   : > { %v363_v20 = vmul.f32 1.442695, %v362_v18 }
  0xf7   : > { %748 = vpow2.f32 %v363_v20 }
 0x101   : > { %v749_v21 = vpop.eup %748 }
 0x102   : > { %v627_v22 = vadd.f32 -1.0, %v749_v21 }
 0x104   : > { %v366_v23 = vmul.f32 1.6732632, %v627_v22 }
 0x106   : > { %v367_v24 = vsel %vm361_vm2, %v356_v15, %v366_v23 }
 0x107   : > { %v368_v25 = vmul.f32 1.050701, %v367_v24 }
 0x109   : > { %v370_v26 = vpack.c.bf16 %v368_v25, %v368_v25 }
 0x10b   : > { %678 = vmatmul.mubr.bf16.vlgmr.msra.gmra.mrb[0].mxu1 %v370_v26 }
 0x1de   : > { %v469_v28 = vpop.f32.mrb[0].mxu1 }
 0x1df   : > { %v475_v29 = vadd.f32 %v469_v28, %v369_v27  ;;  %v679_v30 = vpop.f32.mrb[1].mxu1 }
 0x1e0   : > { %v472_v31 = vpop.f32.mrb[2].mxu1 }
 0x1e1   : > { %476 = vst.msk [vmem:[#allocation2] sm:$0xff] %vm290_vm1, %v475_v29  ;;  %v680_v32 = vpop.f32.mrb[3].mxu1 }
 0x1e8   : > { %v480_v34 = vld [vmem:[#allocation2] sm:$0xff] }
 0x1e9   : > { %v488_v35 = vadd.f32 %v636_v33, %v480_v34 }
 0x1eb   : > { %489 = vst.msk [vmem:[%s267_s9] sm:$0xff] %vm290_vm1, %v488_v35 }
 0x1ec   : > { %763 = shalt.err (!%p760_p5)
}
 0x1ed   : > { %s764_s24 = scalar_lea.hbm %s967_s13, 128  ;;  %s768_s29 = scalar_lea.hbm %s1020_s5, 256 }
 0x1ee   : > { %p765_p6 = scmp.ne.s32.totalorder %s967_s13, %s764_s24  ;;  %p769_p10 = scmp.lt.u32.totalorder %s967_s13, %s1020_s5 }
 0x1ef   : > { %p770_p11 = scmp.lt.u32.totalorder %s768_s29, %s764_s24  ;;  %p772_p13 = scmp.lt.u32.totalorder %s764_s24, %s967_s13 }
 0x1f0   : > { %p766_p7 = pnand %p765_p6, %p903_p4 }
 0x1f1   : > { %p771_p12 = por %p770_p11, %p769_p10 }
 0x1f2   : > { %p767_p9 = pneg %p766_p7 }
 0x1f3   : > { %p773_p0 = por %p772_p13, %p771_p12 }
 0x1f5   : > { %p774_p1 = pnand %p773_p0, %p767_p9 }
 0x1f7   : > { %777 = shalt.err (!%p774_p1)
}
 0x1f8   : > { %681 = dma.vmem_to_hbm [thread:$0]  (%p903_p4), %s969_s10, 128, %s967_s13, %s491_s14  }
 0x1f9 PF: > { %p687_p2 = scmp.ge.s32.totalorder %s828_s23, 2  ;;  %s516_s9 = sand.u32 1, %s808_s18  }
 0x1fa   : > { %s517_s11 = scalar_lea.sflag [#allocation4], %s516_s9 }
 0x1fb   : > { %p684_p3 = pnand %p687_p2, %p910_p8 }
 0x1fd   : > { %803 = dma.done.wait (!%p684_p3), %s517_s11, 128  }
 0x1fe   : > { %805 = vsyncadd (!%p684_p3), %s517_s11, 4294967168  ;;  %s18_s23 = sadd.s32 1, %s828_s23   ;;  %s1023_s18 = smov %s812_s19 }
 0x1ff   : > { %p15_p5 = scmp.ge.s32.totalorder %s18_s23, 4   ;;  %s1024_s19 = smov %s816_s20 }
 0x200   : > { %s1025_s20 = smov %s916_s6  ;;  %s1026_s21 = smov %s824_s22 }
 0x201   : > { %s1027_s22 = smov %s1029_s26  ;;  %17 = sbr.rel (!%p15_p5) target bundleno = 4 (0x4), region = 92 }
 0x208   :  { %522 = vsyncpa [#allocation4], 1 }
 0x209   :  { %524 = vsyncpa [#allocation4 + $0x1], 1 }

// kernel: tpu_custom_call.1
= control target key start
LH: loop header
LB: loop body
LE: loop exit
PB: predicated region body
PF: predicated region fallthrough
CT: control target
= control target key end

     0   :  { %10 = vsyncpa [#allocation4], 0  ;;  %s1015_s0 = inlined_call_operand.vmem [shape: f32[16,32], index: 0, kind: input, shape index: {}]   ;;  %s1016_s1 = inlined_call_operand.vmem [shape: bf16[32,128], index: 1, kind: input, shape index: {}]   ;;  %s1017_s2 = inlined_call_operand.vmem [shape: f32[1,128], index: 2, kind: input, shape index: {}]   ;;  %s1018_s3 = inlined_call_operand.vmem [shape: bf16[128,32], index: 3, kind: input, shape index: {}]   ;;  %s1019_s4 = inlined_call_operand.vmem [shape: f32[1,32], index: 4, kind: input, shape index: {}]   ;;  %s1020_s5 = inlined_call_operand.hbm [shape: f32[16,32], index: 5, kind: output, shape index: {}]  }
   0x1   :  { %12 = vsyncpa [#allocation4 + $0x1], 0  ;;  %s863_s18 = smov 0   ;;  %s865_s19 = smov 0  }
   0x2   :  { %s867_s20 = smov 0   ;;  %s869_s21 = smov 0  }
   0x3   :  { %s871_s22 = smov 0   ;;  %s873_s23 = smov 0  }
   0x4 LB: > { %s613_s24 = sadd.s32 4294967295, %s828_s23   ;;  %s614_s25 = sadd.s32 4294967294, %s828_s23   ;;  %s828_s23 = sphi %s873_s23, %s18_s23   ;;  %s824_s22 = sphi %s871_s22, %s1027_s22   ;;  %s820_s21 = sphi %s869_s21, %s1026_s21   ;;  %s816_s20 = sphi %s867_s20, %s1025_s20   ;;  %s812_s19 = sphi %s865_s19, %s1024_s19   ;;  %s808_s18 = sphi %s863_s18, %s1023_s18  }
   0x5   : > { %s30_s26 = sadd.s32 1, %s824_s22  ;;  %s162_s27 = sadd.s32 1, %s816_s20 }
   0x6   : > { %p32_p0 = scmp.ge.s32.totalorder %s30_s26, 2  ;;  %p172_p1 = scmp.ne.s32.totalorder %s816_s20, %s812_s19 }
   0x7   : > { %p173_p2 = scmp.eq.s32.totalorder %s613_s24, 1  ;;  %p178_p3 = scmp.ne.s32.totalorder %s812_s19, %s808_s18 }
   0x8   : > { %s1029_s26 = smov (%p32_p0, %s30_s26), 0  ;;  %p179_p5 = scmp.eq.s32.totalorder %s614_s25, 1 }
   0x9   : > { %p903_p4 = por %p173_p2, %p172_p1  ;;  %s159_s29 = ssub.s32 %s824_s22, %s1029_s26 }
   0xa   : > { %p620_p6 = scmp.ge.s32.totalorder %s828_s23, 1  ;;  %p160_p7 = scmp.eq.s32.totalorder %s159_s29, 0 }
   0xb   : > { %p910_p8 = por %p179_p5, %p178_p3  ;;  %p229_p9 = scmp.lt.s32.totalorder %s828_s23, 3 }
   0xc   : > { %s916_s6 = scalar_select %p160_p7, %s816_s20, %s162_s27  }
   0xd   : > { %p230_p10 = pnand %p620_p6, %p229_p9 }
   0xe   : > { %v738_v0 = vld [vmem:[%s1016_s1] sm:$0xff] (!%p230_p10)   ;;  %v830_v1 = vmov (!%p230_p10), 0.0   ;;  %v739_v2 = vld [vmem:[%s1016_s1 + $0x8] sm:$0xff] (!%p230_p10)   ;;  %vm831_vm0 = vmmov (!%p230_p10), 0   ;;  %p268_p11 = scmp.lt.s32.totalorder (!%p230_p10), %s820_s21, 1  ;;  %vm290_vm1 = vcmask (!%p230_p10), 261120  }
   0xf   : > { %233 = sbr.rel (%p230_p10) target bundleno = 505 (0x1f9), region = 40  ;;  %653 = vmatprep.subr.bf16.mxu0 (!%p230_p10), %v830_v1  ;;  %661 = vmatprep.subr.bf16.mxu1 (!%p230_p10), %v830_v1  ;;  %291 = vst.msk [vmem:[#allocation2] sm:$0xff] (!%p230_p10), %vm290_vm1, %v830_v1  ;;  %v740_v3 = vld [vmem:[%s1018_s3] sm:$0xff] (!%p230_p10)   ;;  %v741_v6 = vld [vmem:[%s1018_s3 + $0x8] sm:$0xff] (!%p230_p10)   ;;  %v742_v7 = vld [vmem:[%s1018_s3 + $0x10] sm:$0xff] (!%p230_p10)   ;;  %s265_s25 = sand.u32 (!%p230_p10), 1, %s812_s19  }
  0x10   : > { %654 = vmatpush3.bf16.msra.mxu0 (!%p230_p10), %v738_v0  ;;  %657 = vmatprep.mubr.msk.bf16.mxu0 (!%p230_p10), %vm831_vm0, %v830_v1  ;;  %v743_v8 = vld [vmem:[%s1018_s3 + $0x18] sm:$0xff] (!%p230_p10)   ;;  %v744_v9 = vld [vmem:[%s1018_s3 + $0x20] sm:$0xff] (!%p230_p10)   ;;  %v745_v10 = vld [vmem:[%s1018_s3 + $0x28] sm:$0xff] (!%p230_p10)   ;;  %s621_s27 = sshll.u32 (!%p230_p10), %s265_s25, 3  ;;  %s638_s8 = sshll.u32 (!%p230_p10), %s820_s21, 7 }
  0x11   : > { %655 = vmatprep.subr.bf16.mxu0 (!%p230_p10), %v830_v1  ;;  %677 = vmatprep.mubr.msk.bf16.mxu1 (!%p230_p10), %vm831_vm0, %v830_v1  ;;  %v746_v11 = vld [vmem:[%s1018_s3 + $0x30] sm:$0xff] (!%p230_p10)   ;;  %v747_v12 = vld [vmem:[%s1018_s3 + $0x38] sm:$0xff] (!%p230_p10)   ;;  %v623_v13 = vld [vmem:[%s1017_s2] ss:$0 sm:$0xff] (!%p230_p10)  ;;  %s267_s9 = scalar_lea.vmem (!%p230_p10), [#allocation3], %s621_s27 }
  0x12   : > { %662 = vmatpush3.bf16.msra.mxu1 (!%p230_p10), %v740_v3  ;;  %v636_v33 = vld [vmem:[%s1019_s4] ss:$0 sm:$0xff] (!%p230_p10)  ;;  %s504_s10 = sshll.u32 (!%p230_p10), %s267_s9, 4  ;;  %s969_s10 = int_to_ptr.vmem [resolvable:$true] %s504_s10 }
  0x13   : > { %663 = vmatprep.subr.bf16.mxu1 (!%p230_p10), %v830_v1  ;;  %s750_s15 = scalar_lea.vmem (!%p230_p10), %s969_s10, 128 }
  0x14   : > { %656 = vmatpush3.bf16.msra.mxu0 (!%p230_p10), %v739_v2  ;;  %p751_p12 = scmp.ne.s32.totalorder (!%p230_p10), %s969_s10, %s750_s15 }
  0x16   : > { %s269_s13 = scalar_select %p268_p11, %s820_s21, 1  ;;  %664 = vmatpush3.bf16.msra.mxu1 %v741_v6  ;;  %v369_v27 = vld [vmem:[#allocation2] sm:$0xff] }
  0x17   : > { %665 = vmatprep.subr.bf16.mxu1 %v830_v1  ;;  %p752_p13 = pnand %p751_p12, %p903_p4  ;;  %s832_s21 = smov [#allocation3]  }
  0x18   : > { %s622_s14 = sshll.u32 %s269_s13, 3  ;;  %s967_s13 = scalar_lea.hbm %s1020_s5, %s638_s8 }
  0x19   : > { %s271_s17 = scalar_lea.vmem %s1015_s0, %s622_s14  ;;  %s491_s14 = scalar_lea.sflag [#allocation4], %s265_s25 }
  0x1a   : > { %v292_v4 = vld [vmem:[%s271_s17] sm:$0xff]  ;;  %666 = vmatpush3.bf16.msra.mxu1 %v742_v7  ;;  %p753_p0 = pneg %p752_p13  ;;  %s754_s16 = sshll.u32 %s832_s21, 4  ;;  %s755_s16 = int_to_ptr.vmem [resolvable:$false] %s754_s16 }
  0x1b   : > { %v293_v5 = vpack.c.bf16 %v292_v4, %v292_v4  ;;  %667 = vmatprep.subr.bf16.mxu1 %v830_v1  ;;  %s756_s17 = scalar_lea.vmem %s755_s16, 256  ;;  %p757_p1 = scmp.lt.s32.totalorder %s969_s10, %s755_s16 }
  0x1c   : > { %p758_p2 = scmp.lt.s32.totalorder %s756_s17, %s750_s15 }
  0x1d   : > { %658 = vmatmul.mubr.msk.bf16.vlgmr.msra.gmra.mrb[0].mxu0 %vm290_vm1, %v293_v5 }
  0x1e   : > { %668 = vmatpush3.bf16.msra.mxu1 %v743_v8  ;;  %p759_p3 = por %p758_p2, %p757_p1 }
  0x1f   : > { %669 = vmatprep.subr.bf16.mxu1 %v830_v1 }
  0x20   : > { %p760_p5 = pnand %p759_p3, %p753_p0 }
  0x22   : > { %670 = vmatpush3.bf16.msra.mxu1 %v744_v9 }
  0x23   : > { %671 = vmatprep.subr.bf16.mxu1 %v830_v1 }
  0x26   : > { %672 = vmatpush3.bf16.msra.mxu1 %v745_v10 }
  0x27   : > { %673 = vmatprep.subr.bf16.mxu1 %v830_v1 }
  0x2a   : > { %674 = vmatpush3.bf16.msra.mxu1 %v746_v11 }
  0x2b   : > { %675 = vmatprep.subr.bf16.mxu1 %v830_v1 }
  0x2e   : > { %676 = vmatpush3.bf16.msra.mxu1 %v747_v12 }
  0xf0   : > { %v355_v14 = vpop.f32.mrb[0].mxu0 }
  0xf1   : > { %v356_v15 = vadd.f32 %v623_v13, %v355_v14  ;;  %v659_v16 = vpop.f32.mrb[1].mxu0 }
  0xf2   : > { %v358_v17 = vpop.f32.mrb[2].mxu0 }
  0xf3   : > { %v362_v18 = vmin.f32 %v356_v15, 0.0  ;;  %v660_v19 = vpop.f32.mrb[3].mxu0  ;;  %vm361_vm2 = vcmp.gt.f32.partialorder %v356_v15, 0.0 }
  0xf5   : > { %v363_v20 = vmul.f32 1.442695, %v362_v18 }
  0xf7   : > { %748 = vpow2.f32 %v363_v20 }
 0x101   : > { %v749_v21 = vpop.eup %748 }
 0x102   : > { %v627_v22 = vadd.f32 -1.0, %v749_v21 }
 0x104   : > { %v366_v23 = vmul.f32 1.6732632, %v627_v22 }
 0x106   : > { %v367_v24 = vsel %vm361_vm2, %v356_v15, %v366_v23 }
 0x107   : > { %v368_v25 = vmul.f32 1.050701, %v367_v24 }
 0x109   : > { %v370_v26 = vpack.c.bf16 %v368_v25, %v368_v25 }
 0x10b   : > { %678 = vmatmul.mubr.bf16.vlgmr.msra.gmra.mrb[0].mxu1 %v370_v26 }
 0x1de   : > { %v469_v28 = vpop.f32.mrb[0].mxu1 }
 0x1df   : > { %v475_v29 = vadd.f32 %v469_v28, %v369_v27  ;;  %v679_v30 = vpop.f32.mrb[1].mxu1 }
 0x1e0   : > { %v472_v31 = vpop.f32.mrb[2].mxu1 }
 0x1e1   : > { %476 = vst.msk [vmem:[#allocation2] sm:$0xff] %vm290_vm1, %v475_v29  ;;  %v680_v32 = vpop.f32.mrb[3].mxu1 }
 0x1e8   : > { %v480_v34 = vld [vmem:[#allocation2] sm:$0xff] }
 0x1e9   : > { %v488_v35 = vadd.f32 %v636_v33, %v480_v34 }
 0x1eb   : > { %489 = vst.msk [vmem:[%s267_s9] sm:$0xff] %vm290_vm1, %v488_v35 }
 0x1ec   : > { %763 = shalt.err (!%p760_p5)
}
 0x1ed   : > { %s764_s24 = scalar_lea.hbm %s967_s13, 128  ;;  %s768_s29 = scalar_lea.hbm %s1020_s5, 256 }
 0x1ee   : > { %p765_p6 = scmp.ne.s32.totalorder %s967_s13, %s764_s24  ;;  %p769_p10 = scmp.lt.u32.totalorder %s967_s13, %s1020_s5 }
 0x1ef   : > { %p770_p11 = scmp.lt.u32.totalorder %s768_s29, %s764_s24  ;;  %p772_p13 = scmp.lt.u32.totalorder %s764_s24, %s967_s13 }
 0x1f0   : > { %p766_p7 = pnand %p765_p6, %p903_p4 }
 0x1f1   : > { %p771_p12 = por %p770_p11, %p769_p10 }
 0x1f2   : > { %p767_p9 = pneg %p766_p7 }
 0x1f3   : > { %p773_p0 = por %p772_p13, %p771_p12 }
 0x1f5   : > { %p774_p1 = pnand %p773_p0, %p767_p9 }
 0x1f7   : > { %777 = shalt.err (!%p774_p1)
}
 0x1f8   : > { %681 = dma.vmem_to_hbm [thread:$0]  (%p903_p4), %s969_s10, 128, %s967_s13, %s491_s14  }
 0x1f9 PF: > { %p687_p2 = scmp.ge.s32.totalorder %s828_s23, 2  ;;  %s516_s9 = sand.u32 1, %s808_s18  }
 0x1fa   : > { %s517_s11 = scalar_lea.sflag [#allocation4], %s516_s9 }
 0x1fb   : > { %p684_p3 = pnand %p687_p2, %p910_p8 }
 0x1fd   : > { %803 = dma.done.wait (!%p684_p3), %s517_s11, 128  }
 0x1fe   : > { %805 = vsyncadd (!%p684_p3), %s517_s11, 4294967168  ;;  %s18_s23 = sadd.s32 1, %s828_s23   ;;  %s1023_s18 = smov %s812_s19 }
 0x1ff   : > { %p15_p5 = scmp.ge.s32.totalorder %s18_s23, 4   ;;  %s1024_s19 = smov %s816_s20 }
 0x200   : > { %s1025_s20 = smov %s916_s6  ;;  %s1026_s21 = smov %s824_s22 }
 0x201   : > { %s1027_s22 = smov %s1029_s26  ;;  %17 = sbr.rel (!%p15_p5) target bundleno = 4 (0x4), region = 92 }
 0x208   :  { %522 = vsyncpa [#allocation4], 1 }
 0x209   :  { %524 = vsyncpa [#allocation4 + $0x1], 1 }

</bundles_post_ra>
